<compile_context>
chip_gen: v7x
topology: tpu7x:2x2x1
jax: 0.10.0
libtpu: 0.0.40
codegen_flags: <defaults>
</compile_context>

<pallas_src>
import functools
import math

import jax
import jax.numpy as jnp
from jax.experimental import pallas as pl
from jax.experimental.pallas import tpu as pltpu


def make_positional_encoding(d_embedding: int, max_len: int = 100) -> jnp.ndarray:
    """Deterministic sinusoidal PE table, identical to the PyTorch __init__.

    Returns shape (max_len, 1, d_embedding), float32 (parameter setup, plain JAX).
    """
    position = jnp.arange(0, max_len, dtype=jnp.float32)[:, None]              # (max_len, 1)
    div_term = jnp.exp(
        jnp.arange(0, d_embedding, 2, dtype=jnp.float32)
        * (-math.log(10000.0) / d_embedding)
    )                                                                           # (d//2,)
    pe = jnp.zeros((max_len, d_embedding), dtype=jnp.float32)
    pe = pe.at[:, 0::2].set(jnp.sin(position * div_term))
    pe = pe.at[:, 1::2].set(jnp.cos(position * div_term))
    return pe[:, None, :]                                                       # (max_len, 1, d)


def _pe_add_3d_kernel(x_ref, pe_ref, o_ref):
    # x_ref: (tile_s, B, D); pe_ref: (tile_s, D) f32.  Accumulate in f32, cast on VPU.
    x = x_ref[...].astype(jnp.float32)
    pe = pe_ref[...][:, None, :]                       # broadcast over batch in VMEM
    o_ref[...] = (x + pe).astype(o_ref.dtype)


def _pe_add_2d_kernel(batch, x_ref, pe_ref, o_ref):
    # x_ref: (tile_s, B*D) lane-packed; pe_ref: (tile_s, D) f32.
    # Batch-replicate pe along the lane axis in-kernel (VPU/XLU slack is huge under
    # this HBM-bound add) instead of reading a pre-tiled output-sized slab from HBM.
    x = x_ref[...].astype(jnp.float32)
    p = pe_ref[...]
    if batch > 1:
        p = jnp.concatenate([p] * batch, axis=-1)      # (tile_s, B*D)
    o_ref[...] = (x + p).astype(o_ref.dtype)


def _vmem_capacity_bytes() -> int:
    try:
        return int(pltpu.get_tpu_info().vmem_capacity_bytes)
    except Exception:
        return 64 * 1024 * 1024  # v7x per-TC physical VMEM (smallest across generations)


def positional_encoding_forward(
    x: jnp.ndarray,
    pe: jnp.ndarray,
    *,
    min_pallas_bytes: int = 2 * 1024 * 1024,
    target_block_bytes: int = 1 * 1024 * 1024,
    min_block_bytes: int = 512 * 1024,
    force_split_bytes: int = 4 * 1024 * 1024,
    donate_x: bool = False,
) -> jnp.ndarray:
    """x: (S, B, D); pe: (max_len, 1, D) float32. Returns x + pe[:S] in x.dtype."""
    S, B, D = x.shape
    max_len = pe.shape[0]
    if S > max_len:
        raise ValueError(f"sequence length {S} exceeds PE table length {max_len}")

    itemsize = jnp.dtype(x.dtype).itemsize
    nbytes = S * B * D * itemsize

    def _fallback():
        # Tiny / single-block inputs: fixed pallas launch + DMA-setup cost dwarfs the
        # add, and letting XLA fuse it with neighbours is strictly better.
        return (x.astype(jnp.float32) + pe[:S]).astype(x.dtype)

    if nbytes < min_pallas_bytes:
        return _fallback()

    # dtype-aware sublane tile: f32 -> 8, bf16 -> 16, int8/fp8 -> 32.
    sublane = max(8, 32 // itemsize)

    # Layout choice:
    #  * 3-D path: (tile_s, B, D) blocks are already sublane/lane dense (no padding,
    #    unmasked stores); pe broadcast over batch happens in VMEM.
    #  * 2-D path: fold batch into the lane axis -> (S, B*D) slabs so stores are
    #    lane-packed instead of masked partial vst on a tiny (B, D) tile.
    use_3d = (D % 128 == 0) and (B % sublane == 0)

    if use_3d:
        row_x = B * D * itemsize                          # exact: no VMEM padding
        row_pe = D * 4                                    # (tile_s, D) f32, D % 128 == 0
    else:
        row_x = pl.cdiv(B * D, 128) * 128 * itemsize      # lane padding to 128
        row_pe = pl.cdiv(D, 128) * 128 * 4

    vmem_cap = _vmem_capacity_bytes()
    budget = vmem_cap // 2                                # headroom for compiler scratch
    bytes_per_row = 2 * row_x + row_pe                    # x block + out block + pe block
    rows_by_budget = max(1, budget // (2 * bytes_per_row))        # double-buffered
    rows_by_target = max(1, target_block_bytes // row_x)
    min_rows = max(1, min_block_bytes // row_x)                   # v5e: keep blocks >= ~512 KiB

    tile_s = min(S, rows_by_target)
    tile_s = max(tile_s, min_rows)
    if nbytes >= force_split_bytes:
        # Guarantee >= 4 grid steps for large inputs: v7x 2-TC split + real pipelining.
        tile_s = min(tile_s, pl.cdiv(S, 4))
    tile_s = min(tile_s, rows_by_budget, S)
    tile_s = max(sublane, (tile_s // sublane) * sublane)  # dtype-aware sublane rounding

    num_blocks = pl.cdiv(S, tile_s)
    if num_blocks < 2:
        return _fallback()                                # single block: no pipelining win

    vmem_needed = 2 * tile_s * bytes_per_row + (2 << 20)  # exact double-buffered footprint + headroom
    vmem_limit = int(min(vmem_cap * 3 // 4, vmem_needed))

    compiler_params = pltpu.CompilerParams(
        dimension_semantics=("parallel",),                # no cross-iteration state: shard S across TCs
        vmem_limit_bytes=vmem_limit,
    )
    io_aliases = {0: 0} if donate_x else {}

    # pe squeezed to a tiny (S, D) f32 table: no size-1 sublane padding, no per-call
    # output-sized slab, and the kernel re-reads only tile_s * D * 4 bytes per step.
    pe2 = jnp.squeeze(pe, axis=1)[:S].astype(jnp.float32)

    if use_3d:
        return pl.pallas_call(
            _pe_add_3d_kernel,
            out_shape=jax.ShapeDtypeStruct((S, B, D), x.dtype),
            grid=(num_blocks,),
            in_specs=[
                pl.BlockSpec((tile_s, B, D), lambda i: (i, 0, 0)),
                pl.BlockSpec((tile_s, D), lambda i: (i, 0)),
            ],
            out_specs=pl.BlockSpec((tile_s, B, D), lambda i: (i, 0, 0)),
            compiler_params=compiler_params,
            input_output_aliases=io_aliases,
        )(x, pe2)

    # 2-D lane-packed path: x row s = [x[s,0,:], x[s,1,:], ...]; reshape is a bitcast.
    x2 = x.reshape(S, B * D)
    out2 = pl.pallas_call(
        functools.partial(_pe_add_2d_kernel, B),
        out_shape=jax.ShapeDtypeStruct((S, B * D), x.dtype),
        grid=(num_blocks,),
        in_specs=[
            pl.BlockSpec((tile_s, B * D), lambda i: (i, 0)),
            pl.BlockSpec((tile_s, D), lambda i: (i, 0)),
        ],
        out_specs=pl.BlockSpec((tile_s, B * D), lambda i: (i, 0)),
        compiler_params=compiler_params,
        input_output_aliases=io_aliases,
    )(x2, pe2)
    return out2.reshape(S, B, D)


if __name__ == "__main__":
    max_len = 100
    key = jax.random.PRNGKey(0)

    def ref_forward(x, pe):
        return (x.astype(jnp.float32) + pe[: x.shape[0]]).astype(x.dtype)

    # (S, B, D, dtype, forward kwargs) — exercises:
    #  * 3-D dense path (f32, partial last block; bf16 with 16-sublane gating/rounding)
    #  * 2-D lane-packed path with in-kernel pe batch-replication (f32 and bf16)
    #  * tiny-input fallback and single-block fallback.
    small = dict(min_pallas_bytes=0, min_block_bytes=0, target_block_bytes=64 * 1024)
    small2d = dict(min_pallas_bytes=0, min_block_bytes=0, target_block_bytes=8 * 1024)
    cases = [
        (90, 8, 128, jnp.float32, small),     # 3-D path, 6 blocks, partial last block
        (64, 16, 128, jnp.bfloat16, small),   # 3-D path, bf16 sublane=16, 4 blocks
        (60, 4, 64, jnp.float32, small2d),    # 2-D lane-packed, 8 blocks, partial last block
        (64, 4, 64, jnp.bfloat16, small2d),   # 2-D lane-packed, bf16, 4 blocks
        (8, 2, 32, jnp.float32, dict()),      # tiny -> plain-JAX fallback
        (32, 8, 128, jnp.float32, dict(min_pallas_bytes=0)),  # single block -> fallback
    ]

    for idx, (S, B, D, dtype, kwargs) in enumerate(cases):
        key, sub = jax.random.split(key)
        x = jax.random.normal(sub, (S, B, D), dtype=dtype)
        pe = make_positional_encoding(D, max_len)

        ref = ref_forward(x, pe)
        out = positional_encoding_forward(x, pe, **kwargs)
        out = jax.block_until_ready(out)

        assert out.shape == (S, B, D), f"case {idx}: shape {out.shape}"
        assert out.dtype == x.dtype, f"case {idx}: dtype {out.dtype}"
        atol = 1e-6 if dtype == jnp.float32 else 2e-2
        assert jnp.allclose(out.astype(jnp.float32), ref.astype(jnp.float32),
                            atol=atol), f"mismatch vs reference in case {idx}"

    print("KERNEL_OK")
</pallas_src>

<mosaic_0001>
module attributes {stable_mosaic.version = 11 : i64} {
  func.func @_pe_add_3d_kernel(%arg0: i32, %arg1: memref<16x8x128xf32, #tpu.memory_space<vmem>>, %arg2: memref<16x128xf32, #tpu.memory_space<vmem>>, %arg3: memref<16x8x128xf32, #tpu.memory_space<vmem>>) attributes {dimension_semantics = [#tpu.dimension_semantics<parallel>], iteration_bounds = array<i64: 6>, scalar_prefetch = 0 : i64, scratch_operands = 0 : i64, tpu.core_type = #tpu.core_type<tc>, window_params = [{transform_indices = @transform_0, window_bounds = array<i64: 16, 8, 128>}, {transform_indices = @transform_1, window_bounds = array<i64: 16, 128>}, {transform_indices = @transform_2, window_bounds = array<i64: 16, 8, 128>}]} {
    %c0 = arith.constant 0 : index
    %c0_0 = arith.constant 0 : index
    %c0_1 = arith.constant 0 : index
    %0 = vector.load %arg1[%c0, %c0_0, %c0_1] : memref<16x8x128xf32, #tpu.memory_space<vmem>>, vector<16x8x128xf32>
    %c0_2 = arith.constant 0 : index
    %c0_3 = arith.constant 0 : index
    %1 = vector.load %arg2[%c0_2, %c0_3] : memref<16x128xf32, #tpu.memory_space<vmem>>, vector<16x128xf32>
    %2 = vector.shape_cast %1 : vector<16x128xf32> to vector<16x1x128xf32>
    %3 = vector.broadcast %2 : vector<16x1x128xf32> to vector<16x8x128xf32>
    %4 = arith.addf %0, %3 : vector<16x8x128xf32>
    %c0_4 = arith.constant 0 : index
    %c0_5 = arith.constant 0 : index
    %c0_6 = arith.constant 0 : index
    %5 = vector.load %arg3[%c0_4, %c0_5, %c0_6] : memref<16x8x128xf32, #tpu.memory_space<vmem>>, vector<16x8x128xf32>
    tpu.vector_store %arg3[%c0_4, %c0_5, %c0_6], %4 {strides = array<i32>} : memref<16x8x128xf32, #tpu.memory_space<vmem>>, vector<16x8x128xf32>,
    return
  }
  func.func @transform_0(%arg0: i32) -> (i32, i32, i32) {
    %c0_i32 = arith.constant 0 : i32
    %c0_i32_0 = arith.constant 0 : i32
    %c0_i32_1 = arith.constant 0 : i32
    return %arg0, %c0_i32, %c0_i32_0 : i32, i32, i32
  }
  func.func @transform_1(%arg0: i32) -> (i32, i32) {
    %c0_i32 = arith.constant 0 : i32
    %c0_i32_0 = arith.constant 0 : i32
    return %arg0, %c0_i32 : i32, i32
  }
  func.func @transform_2(%arg0: i32) -> (i32, i32, i32) {
    %c0_i32 = arith.constant 0 : i32
    %c0_i32_0 = arith.constant 0 : i32
    %c0_i32_1 = arith.constant 0 : i32
    return %arg0, %c0_i32, %c0_i32_0 : i32, i32, i32
  }
}

</mosaic_0001>

<bundles_post_ra>
// kernel: tpu_custom_call.1
= control target key start
LH: loop header
LB: loop body
LE: loop exit
PB: predicated region body
PF: predicated region fallthrough
CT: control target
= control target key end

     0   :  { %7 = vsyncpa [#allocation3], 0  ;;  %s1082_s0 = inlined_call_operand.hbm [shape: f32[90,8,128], index: 0, kind: input, shape index: {}]   ;;  %s1083_s1 = inlined_call_operand.hbm [shape: f32[90,128], index: 1, kind: input, shape index: {}]   ;;  %s1084_s2 = inlined_call_operand.hbm [shape: f32[90,8,128], index: 2, kind: output, shape index: {}]  }
   0x1   :  { %9 = vsyncpa [#allocation3 + $0x1], 0 }
   0x2   :  { %10 = vsyncpa [#allocation6], 0 }
   0x3   :  { %12 = vsyncpa [#allocation6 + $0x1], 0 }
   0x4   :  { %13 = vsyncpa [#allocation4], 0 }
   0x5   :  { %15 = vsyncpa [#allocation4 + $0x1], 0  ;;  %s797_s9 = smov 0   ;;  %s799_s10 = smov 0  }
   0x6   :  { %s801_s11 = smov 0   ;;  %s803_s12 = smov 0  }
   0x7 LB: > { %s818_s13 = sadd.s32 4294967295, %s770_s12   ;;  %s565_s14 = sadd.s32 4294967294, %s770_s12   ;;  %s770_s12 = sphi %s803_s12, %s1094_s12   ;;  %s766_s11 = sphi %s801_s11, %s1093_s11   ;;  %s762_s10 = sphi %s799_s10, %s1092_s10   ;;  %s758_s9 = sphi %s797_s9, %s1091_s9  }
   0x8   : > { %s822_s15 = sadd.s32 1, %s770_s12   ;;  %s28_s16 = sadd.s32 1, %s766_s11 }
   0x9   : > { %s25_s17 = ssub.s32 %s770_s12, %s822_s15  ;;  %p35_p0 = scmp.ne.s32.totalorder %s766_s11, %s762_s10 }
   0xa   : > { %p26_p1 = scmp.eq.s32.totalorder %s25_s17, 0  ;;  %p36_p2 = scmp.eq.s32.totalorder %s770_s12, 0 }
   0xb   : > { %p41_p3 = scmp.ne.s32.totalorder %s762_s10, %s758_s9  ;;  %p42_p4 = scmp.eq.s32.totalorder %s818_s13, 0 }
   0xc   : > { %s834_s18 = scalar_select %p26_p1, %s766_s11, %s28_s16  }
   0xd   : > { %p836_p5 = por %p36_p2, %p35_p0  ;;  %p840_p6 = por %p42_p4, %p41_p3 }
   0xe   : > { %p91_p7 = scmp.eq.s32.totalorder %s818_s13, 5  ;;  %p97_p8 = scmp.eq.s32.totalorder %s565_s14, 5 }
   0xf   : > { %p567_p11 = scmp.ge.s32.totalorder %s770_s12, 6 }
  0x10   : > { %p845_p9 = por %p91_p7, %p35_p0  ;;  %p849_p10 = por %p97_p8, %p41_p3 }
  0x11   : > { %113 = sbr.rel (%p567_p11) target bundleno = 85 (0x55), region = 16 }
  0x12   : > { %s1087_s21 = scalar_select %p845_p9, 1, 0 }
  0x13   : > { %s1088_s22 = scalar_select %p849_p10, 1, 0 }
  0x18   : > { %116 = sbr.rel (!%p836_p5) target bundleno = 59 (0x3b), region = 20  ;;  %s117_s23 = sand.u32 (%p836_p5), 1, %s766_s11  }
  0x19   : > { %s569_s24 = sshll.u32 (%p836_p5), %s770_s12, 4  ;;  %s568_s25 = sshll.u32 (%p836_p5), %s117_s23, 7 }
  0x1a   : > { %s123_s26 = ssub.s32 (%p836_p5), 90, %s569_s24  ;;  %s861_s29 = scalar_lea.sflag (%p836_p5), [#allocation3], %s117_s23 }
  0x1b   : > { %p124_p12 = scmp.lt.s32.totalorder (%p836_p5), %s123_s26, 16  ;;  %s121_s30 = scalar_lea.vmem (%p836_p5), [#allocation2], %s568_s25 }
  0x1f   : > { %s1096_s26 = smov (!%p124_p12, %s123_s26), 16 }
  0x20   : > { %s858_s27 = sshll.u32 %s1096_s26, 7 }
  0x21   : > { %s128_s28 = ssub.s32 2048, %s858_s27 }
  0x22   : > { %129 = vsyncadd %s861_s29, %s128_s28  ;;  %p571_p13 = scmp.ne.s32.totalorder %s858_s27, 0  ;;  %s591_s3 = sshll.u32 %s770_s12, 11 }
  0x23   : > { %s869_s6 = scalar_lea.hbm %s1082_s0, %s591_s3  ;;  %s134_s7 = sshll.u32 %s121_s30, 4  ;;  %s871_s7 = int_to_ptr.vmem [resolvable:$true] %s134_s7 }
  0x24   : > { %s644_s8 = scalar_lea.hbm %s869_s6, %s858_s27  ;;  %s648_s17 = scalar_lea.hbm %s1082_s0, 11520 }
  0x25   : > { %p645_p0 = scmp.ne.s32.totalorder %s869_s6, %s644_s8  ;;  %p649_p3 = scmp.lt.u32.totalorder %s869_s6, %s1082_s0 }
  0x26   : > { %p650_p4 = scmp.lt.u32.totalorder %s648_s17, %s644_s8  ;;  %p652_p8 = scmp.lt.u32.totalorder %s644_s8, %s869_s6 }
  0x27   : > { %p646_p1 = pnand %p645_p0, %p571_p13 }
  0x28   : > { %p651_p7 = por %p650_p4, %p649_p3 }
  0x29   : > { %p647_p2 = pneg %p646_p1 }
  0x2a   : > { %p653_p11 = por %p652_p8, %p651_p7 }
  0x2c   : > { %p654_p12 = pnand %p653_p11, %p647_p2 }
  0x2e   : > { %657 = shalt.err (!%p654_p12)
}
  0x2f   : > { %s658_s25 = scalar_lea.vmem %s871_s7, %s858_s27  ;;  %s772_s26 = smov [#allocation2]  }
  0x30   : > { %p659_p0 = scmp.ne.s32.totalorder %s871_s7, %s658_s25  ;;  %s662_s28 = sshll.u32 %s772_s26, 4  ;;  %s663_s28 = int_to_ptr.vmem [resolvable:$false] %s662_s28 }
  0x31   : > { %s664_s30 = scalar_lea.vmem %s663_s28, 4096  ;;  %p665_p9 = scmp.lt.s32.totalorder %s871_s7, %s663_s28 }
  0x32   : > { %p660_p1 = pnand %p659_p0, %p571_p13  ;;  %p666_p3 = scmp.lt.s32.totalorder %s664_s30, %s658_s25 }
  0x34   : > { %p661_p10 = pneg %p660_p1  ;;  %p667_p4 = por %p666_p3, %p665_p9 }
  0x36   : > { %p668_p7 = pnand %p667_p4, %p661_p10 }
  0x38   : > { %671 = shalt.err (!%p668_p7)
}
  0x39   : > { %s773_s3 = smov 128   ;;  %s774_s4 = smov 8  }
  0x3a   : > { %140 = dma.hbm_to_vmem [thread:$0]  (%p571_p13), %s869_s6, %s858_s27, %s871_s7, %s861_s29, %s773_s3, %s773_s3, %s774_s4  }
  0x3b PF: > { %s144_s5 = sand.u32 1, %s766_s11   ;;  %s592_s8 = sshll.u32 %s770_s12, 8 }
  0x3c   : > { %s575_s14 = sshll.u32 %s144_s5, 4  ;;  %s903_s23 = scalar_lea.hbm %s1083_s1, %s592_s8 }
  0x3d   : > { %s148_s24 = scalar_lea.vmem [#allocation5], %s575_s14  ;;  %s907_s27 = scalar_lea.sflag [#allocation6], %s144_s5 }
  0x3e   : > { %s155_s25 = sshll.u32 %s148_s24, 4  ;;  %s672_s29 = scalar_lea.hbm %s903_s23, 256  ;;  %s905_s25 = int_to_ptr.vmem [resolvable:$true] %s155_s25 }
  0x3f   : > { %p673_p9 = scmp.ne.s32.totalorder %s903_s23, %s672_s29  ;;  %s676_s26 = scalar_lea.hbm %s1083_s1, 1536 }
  0x40   : > { %p677_p2 = scmp.lt.u32.totalorder %s903_s23, %s1083_s1  ;;  %p678_p8 = scmp.lt.u32.totalorder %s676_s26, %s672_s29 }
  0x41   : > { %p674_p10 = pnand %p673_p9, %p836_p5  ;;  %p680_p12 = scmp.lt.u32.totalorder %s672_s29, %s903_s23 }
  0x42   : > { %p679_p11 = por %p678_p8, %p677_p2 }
  0x43   : > { %p675_p13 = pneg %p674_p10 }
  0x44   : > { %p681_p0 = por %p680_p12, %p679_p11 }
  0x46   : > { %p682_p1 = pnand %p681_p0, %p675_p13 }
  0x48   : > { %685 = shalt.err (!%p682_p1)
}
  0x49   : > { %s686_s3 = scalar_lea.vmem %s905_s25, 256  ;;  %s775_s4 = smov [#allocation5]  }
  0x4a   : > { %p687_p3 = scmp.ne.s32.totalorder %s905_s25, %s686_s3  ;;  %s690_s5 = sshll.u32 %s775_s4, 4  ;;  %s691_s5 = int_to_ptr.vmem [resolvable:$false] %s690_s5 }
  0x4b   : > { %s692_s8 = scalar_lea.vmem %s691_s5, 512  ;;  %p693_p9 = scmp.lt.s32.totalorder %s905_s25, %s691_s5 }
  0x4c   : > { %p688_p4 = pnand %p687_p3, %p836_p5  ;;  %p694_p10 = scmp.lt.s32.totalorder %s692_s8, %s686_s3 }
  0x4e   : > { %p689_p7 = pneg %p688_p4  ;;  %p695_p2 = por %p694_p10, %p693_p9 }
  0x50   : > { %p696_p8 = pnand %p695_p2, %p689_p7 }
  0x52   : > { %699 = shalt.err (!%p696_p8)
}
  0x53   : > { %s776_s14 = smov 128   ;;  %s777_s16 = smov 8  }
  0x54   : > { %594 = dma.hbm_to_vmem [thread:$0]  (%p836_p5), %s903_s23, 256, %s905_s25, %s907_s27, %s776_s14, %s776_s14, %s777_s16  }
  0x55 PF: > { %p578_p13 = scmp.ge.s32.totalorder %s770_s12, 1  ;;  %p163_p11 = scmp.lt.s32.totalorder %s770_s12, 7 }
  0x57   : > { %p164_p12 = pnand %p578_p13, %p163_p11 }
  0x58   : > { %s934_s17 = sand.u32 (!%p164_p12), 1, %s762_s10  }
  0x59   : > { %167 = sbr.rel (%p164_p12) target bundleno = 156 (0x9c), region = 28  ;;  %s579_s24 = sshll.u32 (!%p164_p12), %s934_s17, 7 }
  0x5a   : > { %s170_s29 = scalar_lea.sflag (!%p164_p12), [#allocation3], %s934_s17  ;;  %s940_s6 = scalar_lea.vmem (!%p164_p12), [#allocation2], %s579_s24 }
  0x60   : > { %745 = dma.done.wait (%p840_p6), %s170_s29, 2048  }
  0x61   : > { %747 = vsyncadd (%p840_p6), %s170_s29, 4294965248  ;;  %s580_s19 = sshll.u32 %s934_s17, 4  ;;  %s179_s23 = scalar_lea.sflag [#allocation6], %s934_s17 }
  0x62   : > { %s182_s25 = scalar_lea.vmem [#allocation5], %s580_s19 }
  0x63   : > { %749 = dma.done.wait (%p840_p6), %s179_s23, 256  }
  0x64   : > { %751 = vsyncadd (%p840_p6), %s179_s23, 4294967040  ;;  %v243_v0 = vlaneseq  ;;  %v778_v1 = vmov 1966171168   ;;  %v235_v6 = vld [vmem:[%s182_s25] sm:$0xff]  ;;  %v236_v13 = vld [vmem:[%s182_s25 + $0x8] sm:$0xff]  ;;  %s978_s20 = scalar_lea.vmem [#allocation7], %s579_s24 }
  0x65   : > { %v241_v2 = vunpack.c.l.s4 %v778_v1  ;;  %v239_v9 = vcombine.high %v235_v6, %v235_v6  ;;  %v219_v14 = vld [vmem:[%s940_s6] sm:$0xff]  ;;  %v288_v16 = vcombine.high %v236_v13, %v236_v13  ;;  %v220_v21 = vld [vmem:[%s940_s6 + $0x8] sm:$0xff]  ;;  %v221_v22 = vld [vmem:[%s940_s6 + $0x10] sm:$0xff]  ;;  %s450_s27 = scalar_lea.sflag [#allocation4], %s934_s17  ;;  %p1089_p5 = scmp.ne.s32.totalorder %s1087_s21, 0 }
  0x66   : > { %v244_v3 = vshrl.u32 %v243_v0, 7  ;;  %v223_v31 = vld [vmem:[%s940_s6 + $0x20] sm:$0xff]  ;;  %v222_v32 = vld [vmem:[%s940_s6 + $0x18] sm:$0xff]  ;;  %v224_v41 = vld [vmem:[%s940_s6 + $0x28] sm:$0xff]  ;;  %s583_s7 = sshll.u32 (%p1089_p5), %s818_s13, 4 }
  0x67   : > { %v242_v4 = vunpack.c.0.s8 %v241_v2  ;;  %v227_v36 = vld [vmem:[%s940_s6 + $0x40] sm:$0xff]  ;;  %v225_v42 = vld [vmem:[%s940_s6 + $0x30] sm:$0xff]  ;;  %v228_v48 = vld [vmem:[%s940_s6 + $0x48] sm:$0xff]  ;;  %s458_s26 = ssub.s32 (%p1089_p5), 90, %s583_s7 }
  0x68   : > { %v955_v8 = vsub.s32 0, %v244_v3  ;;  %v226_v50 = vld [vmem:[%s940_s6 + $0x38] sm:$0xff]  ;;  %v229_v57 = vld [vmem:[%s940_s6 + $0x50] sm:$0xff]  ;;  %v231_v2 = vld [vmem:[%s940_s6 + $0x60] sm:$0xff]  ;;  %p459_p6 = scmp.lt.s32.totalorder (%p1089_p5), %s458_s26, 16 }
  0x69   : > { %v952_v5 = vsub.s32 %v242_v4, %v244_v3  ;;  %v230_v61 = vld [vmem:[%s940_s6 + $0x58] sm:$0xff] }
  0x6b   : > { %v246_v7 = vrot.slane %v235_v6, %v952_v5  ;;  %v253_v12 = vrot.slane %v239_v9, %v952_v5  ;;  %v295_v15 = vrot.slane %v236_v13, %v952_v5  ;;  %v302_v26 = vrot.slane %v288_v16, %v952_v5  ;;  %v234_v16 = vld [vmem:[%s940_s6 + $0x78] sm:$0xff] }
  0x6d   : > { %v262_v10 = vrot.slane %v246_v7, %v952_v5  ;;  %v254_v11 = vcombine.high %v246_v7, %v246_v7  ;;  %v269_v20 = vrot.slane %v253_v12, %v952_v5  ;;  %v255_v23 = vcombine.high %v253_v12, %v253_v12 }
  0x6e   : > { %v311_v24 = vrot.slane %v295_v15, %v952_v5  ;;  %v303_v25 = vcombine.high %v295_v15, %v295_v15  ;;  %v318_v62 = vrot.slane %v302_v26, %v952_v5  ;;  %v304_v63 = vcombine.high %v302_v26, %v302_v26 }
  0x6f   : > { %v340_v17 = vrot.slane %v262_v10, %v955_v8  ;;  %v276_v18 = vrot.slane %v254_v11, %v952_v5  ;;  %v284_v19 = vcombine.high %v262_v10, %v262_v10  ;;  %v356_v33 = vrot.slane %v269_v20, %v955_v8  ;;  %v232_v10 = vld [vmem:[%s940_s6 + $0x68] sm:$0xff]  ;;  %v233_v11 = vld [vmem:[%s940_s6 + $0x70] sm:$0xff] }
  0x70   : > { %v283_v34 = vrot.slane %v255_v23, %v952_v5  ;;  %v285_v35 = vcombine.high %v269_v20, %v269_v20  ;;  %v372_v37 = vrot.slane %v311_v24, %v955_v8  ;;  %v325_v43 = vrot.slane %v303_v25, %v952_v5 }
  0x71   : > { %v417_v27 = vadd.f32 %v340_v17, %v219_v14  ;;  %v344_v28 = vrot.slane %v276_v18, %v955_v8  ;;  %v348_v29 = vrot.slane %v284_v19, %v955_v8  ;;  %v286_v30 = vcombine.high %v276_v18, %v276_v18 }
  0x72   : > { %v421_v44 = vadd.f32 %v356_v33, %v223_v31  ;;  %v360_v45 = vrot.slane %v283_v34, %v955_v8  ;;  %v364_v46 = vrot.slane %v285_v35, %v955_v8  ;;  %v287_v47 = vcombine.high %v283_v34, %v283_v34 }
  0x73   : > { %433 = vst [vmem:[%s978_s20] sm:$0xff] %v417_v27  ;;  %v418_v38 = vadd.f32 %v344_v28, %v220_v21  ;;  %v419_v39 = vadd.f32 %v348_v29, %v221_v22  ;;  %v352_v40 = vrot.slane %v286_v30, %v955_v8  ;;  %v425_v51 = vadd.f32 %v372_v37, %v227_v36 }
  0x74   : > { %v376_v52 = vrot.slane %v325_v43, %v955_v8  ;;  %v333_v53 = vcombine.high %v311_v24, %v311_v24  ;;  %437 = vst [vmem:[%s978_s20 + $0x20] sm:$0xff] %v421_v44  ;;  %v422_v54 = vadd.f32 %v360_v45, %v224_v41  ;;  %v423_v55 = vadd.f32 %v364_v46, %v225_v42 }
  0x75   : > { %434 = vst [vmem:[%s978_s20 + $0x8] sm:$0xff] %v418_v38  ;;  %435 = vst [vmem:[%s978_s20 + $0x10] sm:$0xff] %v419_v39  ;;  %v420_v49 = vadd.f32 %v352_v40, %v222_v32  ;;  %v368_v56 = vrot.slane %v287_v47, %v955_v8  ;;  %v335_v58 = vcombine.high %v325_v43, %v325_v43 }
  0x76   : > { %441 = vst [vmem:[%s978_s20 + $0x40] sm:$0xff] %v425_v51  ;;  %v426_v59 = vadd.f32 %v376_v52, %v228_v48  ;;  %v380_v60 = vrot.slane %v333_v53, %v955_v8  ;;  %438 = vst [vmem:[%s978_s20 + $0x28] sm:$0xff] %v422_v54  ;;  %v388_v4 = vrot.slane %v318_v62, %v955_v8 }
  0x77   : > { %436 = vst [vmem:[%s978_s20 + $0x18] sm:$0xff] %v420_v49  ;;  %439 = vst [vmem:[%s978_s20 + $0x30] sm:$0xff] %v423_v55  ;;  %v424_v0 = vadd.f32 %v368_v56, %v226_v50  ;;  %v384_v1 = vrot.slane %v335_v58, %v955_v8  ;;  %v332_v6 = vrot.slane %v304_v63, %v952_v5 }
  0x78   : > { %442 = vst [vmem:[%s978_s20 + $0x48] sm:$0xff] %v426_v59  ;;  %v427_v3 = vadd.f32 %v380_v60, %v229_v57  ;;  %v334_v7 = vcombine.high %v318_v62, %v318_v62  ;;  %v429_v12 = vadd.f32 %v388_v4, %v231_v2 }
  0x79   : > { %440 = vst [vmem:[%s978_s20 + $0x38] sm:$0xff] %v424_v0  ;;  %v428_v9 = vadd.f32 %v384_v1, %v230_v61  ;;  %v392_v13 = vrot.slane %v332_v6, %v955_v8  ;;  %v336_v15 = vcombine.high %v332_v6, %v332_v6  ;;  %456 = sbr.rel (!%p1089_p5) target bundleno = 156 (0x9c), region = 40 }
  0x7a   : > { %443 = vst [vmem:[%s978_s20 + $0x50] sm:$0xff] %v427_v3  ;;  %v396_v14 = vrot.slane %v334_v7, %v955_v8  ;;  %445 = vst [vmem:[%s978_s20 + $0x60] sm:$0xff] %v429_v12 }
  0x7b   : > { %444 = vst [vmem:[%s978_s20 + $0x58] sm:$0xff] %v428_v9  ;;  %v430_v5 = vadd.f32 %v392_v13, %v232_v10  ;;  %v400_v18 = vrot.slane %v336_v15, %v955_v8 }
  0x7c   : > { %v431_v17 = vadd.f32 %v396_v14, %v233_v11 }
  0x7d   : > { %446 = vst [vmem:[%s978_s20 + $0x68] sm:$0xff] %v430_v5  ;;  %v432_v19 = vadd.f32 %v400_v18, %v234_v16 }
  0x7e   : > { %447 = vst [vmem:[%s978_s20 + $0x70] sm:$0xff] %v431_v17 }
  0x7f   : > { %448 = vst [vmem:[%s978_s20 + $0x78] sm:$0xff] %v432_v19 }
  0x80   : > { %s1098_s26 = smov (!%p459_p6, %s458_s26), 16 }
  0x81   : > { %s1024_s28 = sshll.u32 %s1098_s26, 7 }
  0x82   : > { %s463_s30 = ssub.s32 2048, %s1024_s28 }
  0x83   : > { %464 = vsyncadd %s450_s27, %s463_s30  ;;  %p585_p0 = scmp.ne.s32.totalorder %s1024_s28, 0  ;;  %s593_s21 = sshll.u32 %s818_s13, 11 }
  0x84   : > { %s1034_s5 = scalar_lea.hbm %s1084_s2, %s593_s21  ;;  %s469_s8 = sshll.u32 %s978_s20, 4  ;;  %s1037_s8 = int_to_ptr.vmem [resolvable:$true] %s469_s8 }
  0x85   : > { %s700_s14 = scalar_lea.vmem %s1037_s8, %s1024_s28  ;;  %s779_s16 = smov [#allocation7]  }
  0x86   : > { %p701_p1 = scmp.ne.s32.totalorder %s1037_s8, %s700_s14  ;;  %s704_s24 = sshll.u32 %s779_s16, 4  ;;  %s705_s24 = int_to_ptr.vmem [resolvable:$false] %s704_s24 }
  0x87   : > { %s706_s13 = scalar_lea.vmem %s705_s24, 4096  ;;  %p707_p7 = scmp.lt.s32.totalorder %s1037_s8, %s705_s24 }
  0x88   : > { %p702_p3 = pnand %p701_p1, %p585_p0  ;;  %p708_p9 = scmp.lt.s32.totalorder %s706_s13, %s700_s14 }
  0x8a   : > { %p703_p4 = pneg %p702_p3  ;;  %p709_p10 = por %p708_p9, %p707_p7 }
  0x8c   : > { %p710_p2 = pnand %p709_p10, %p703_p4 }
  0x8e   : > { %713 = shalt.err (!%p710_p2)
}
  0x8f   : > { %s714_s29 = scalar_lea.hbm %s1034_s5, %s1024_s28  ;;  %s718_s23 = scalar_lea.hbm %s1084_s2, 11520 }
  0x90   : > { %p715_p8 = scmp.ne.s32.totalorder %s1034_s5, %s714_s29  ;;  %p719_p12 = scmp.lt.u32.totalorder %s1034_s5, %s1084_s2 }
  0x91   : > { %p720_p5 = scmp.lt.u32.totalorder %s718_s23, %s714_s29  ;;  %p722_p1 = scmp.lt.u32.totalorder %s714_s29, %s1034_s5 }
  0x92   : > { %p716_p13 = pnand %p715_p8, %p585_p0 }
  0x93   : > { %p721_p6 = por %p720_p5, %p719_p12 }
  0x94   : > { %p717_p11 = pneg %p716_p13 }
  0x95   : > { %p723_p3 = por %p722_p1, %p721_p6 }
  0x97   : > { %p724_p4 = pnand %p723_p3, %p717_p11 }
  0x99   : > { %727 = shalt.err (!%p724_p4)
}
  0x9a   : > { %s780_s7 = smov 128   ;;  %s781_s26 = smov 8  }
  0x9b   : > { %475 = dma.vmem_to_hbm [thread:$0]  (%p585_p0), %s1037_s8, %s1024_s28, %s1034_s5, %s450_s27, %s780_s7, %s780_s7, %s781_s26  }
  0x9c PF: > { %p602_p7 = scmp.ge.s32.totalorder %s770_s12, 2  ;;  %s484_s30 = sand.u32 1, %s758_s9  }
  0x9d   : > { %p1090_p9 = scmp.ne.s32.totalorder %s1088_s22, 0  ;;  %s485_s21 = scalar_lea.sflag [#allocation4], %s484_s30 }
  0x9f   : > { %p599_p10 = pnand %p602_p7, %p1090_p9 }
  0xa1   : > { %753 = dma.done.wait (!%p599_p10), %s485_s21, 2048  }
  0xa2   : > { %755 = vsyncadd (!%p599_p10), %s485_s21, 4294965248  ;;  %p18_p2 = scmp.ge.s32.totalorder %s822_s15, 8   ;;  %s1091_s9 = smov %s762_s10 }
  0xa3   : > { %s1092_s10 = smov %s766_s11  ;;  %s1093_s11 = smov %s834_s18 }
  0xa4   : > { %s1094_s12 = smov %s822_s15  ;;  %20 = sbr.rel (!%p18_p2) target bundleno = 7 (0x7), region = 86 }
  0xab   :  { %490 = vsyncpa [#allocation3], 1 }
  0xac   :  { %492 = vsyncpa [#allocation3 + $0x1], 1 }
  0xad   :  { %493 = vsyncpa [#allocation6], 1 }
  0xae   :  { %495 = vsyncpa [#allocation6 + $0x1], 1 }
  0xaf   :  { %496 = vsyncpa [#allocation4], 1 }
  0xb0   :  { %498 = vsyncpa [#allocation4 + $0x1], 1 }

</bundles_post_ra>
